<compile_context>
chip_gen: v5e
topology: v5e:2x2
jax: 0.10.0
libtpu: 0.0.40
codegen_flags: <defaults>
</compile_context>

<pallas_src>
import functools

import numpy as np

import jax
import jax.numpy as jnp
from jax.experimental import pallas as pl
from jax.experimental.pallas import tpu as pltpu


def _round_up(x, m):
    return (x + m - 1) // m * m


def _symmetry_loss_kernel(bones, weights, coord_dim, inv_batch,
                          y_ref, out_ref, acc_ref):
    """One grid step over a (J*D, block_B) batch tile.

    bones      : static tuple of ((l0, l1), (r0, r1)) joint-index pairs
    weights    : static tuple of per-bone floats
    coord_dim  : D (static)
    inv_batch  : 1 / total_batch (static float)
    y_ref      : VMEM [J*D, block_B]   (input dtype; batch on lanes)
    out_ref    : SMEM f32[1, 1]        (final scalar loss)
    acc_ref    : SMEM f32[1, 1]        (running sum across grid steps)
    """
    pid = pl.program_id(0)
    n_blocks = pl.num_programs(0)

    @pl.when(pid == 0)
    def _init():
        acc_ref[0, 0] = jnp.float32(0.0)

    block_b = y_ref.shape[1]
    d = coord_dim

    def joint(j):
        # Static sublane slice of the VMEM tile: coords of joint j, all lanes.
        return y_ref[pl.ds(j * d, d), :].astype(jnp.float32)   # (D, block_B)

    block_loss = jnp.zeros((1, block_b), dtype=jnp.float32)
    for w, ((l0, l1), (r0, r1)) in zip(weights, bones):
        dl = joint(l0) - joint(l1)                              # (D, block_B)
        dr = joint(r0) - joint(r1)                              # (D, block_B)
        l2 = jnp.sum(dl * dl, axis=0, keepdims=True)            # (1, block_B)
        r2 = jnp.sum(dr * dr, axis=0, keepdims=True)            # (1, block_B)
        # (sqrt(l2) - sqrt(r2))**2 == l2 + r2 - 2*sqrt(l2*r2): one EUP sqrt/bone.
        asym = l2 + r2 - 2.0 * jnp.sqrt(l2 * r2)
        block_loss = block_loss + w * asym

    # Padded batch lanes are all-zero -> contribute exactly 0 to this sum.
    acc_ref[0, 0] += jnp.sum(block_loss)

    @pl.when(pid == n_blocks - 1)
    def _finalize():
        out_ref[0, 0] = acc_ref[0, 0] * inv_batch


def symmetry_loss(ypred, left_bones, right_bones, weights=None,
                  reduction="batchmean", *, block_b=None):
    """Pallas TPU implementation of SymmetryLoss.forward."""
    assert reduction in ("mean", "batchmean")

    J, D = int(ypred.shape[-2]), int(ypred.shape[-1])
    y = jnp.reshape(ypred, (-1, J, D))          # keep input dtype (bf16 stays bf16)
    B = int(y.shape[0])

    bones = tuple(zip(tuple(tuple(int(v) for v in l) for l in left_bones),
                      tuple(tuple(int(v) for v in r) for r in right_bones)))
    n_bones = len(bones)

    if weights is None:
        # torch default: ones(ypred.shape[-2]) indexed per bone -> all 1.0.
        w_static = (1.0,) * n_bones
    else:
        w_arr = np.asarray(jax.device_get(weights), dtype=np.float32).reshape(-1)
        assert w_arr.shape[0] >= n_bones, (
            f"weights has {w_arr.shape[0]} entries but {n_bones} bone pairs")
        w_static = tuple(float(w_arr[i]) for i in range(n_bones))

    # Lane-dense layout: (B, J, D) -> (J, D, B) -> (J*D, B); batch on lanes.
    y2d = jnp.reshape(jnp.transpose(y, (1, 2, 0)), (J * D, B))

    # Batch tiling: multiples of 128 lanes, capped so the double-buffered tile
    # stays well under the scoped-VMEM defaults on v5e/v6e/v7x
    # (48 * 8192 * 4B * 2 buffers ~= 3 MiB for f32).
    if block_b is None:
        block_b = min(8192, _round_up(B, 128))
    else:
        block_b = _round_up(int(block_b), 128)
    num_blocks = int(pl.cdiv(B, block_b))
    b_pad = num_blocks * block_b
    if b_pad != B:
        # Zero padding contributes exactly zero to the loss sum.
        y2d = jnp.pad(y2d, ((0, 0), (0, b_pad - B)))

    itemsize = jnp.dtype(y2d.dtype).itemsize
    cost = pl.CostEstimate(
        flops=int(n_bones * B * (4 * D + 8)),
        transcendentals=int(n_bones * B),
        bytes_accessed=int(b_pad * J * D * itemsize + 4),
    )

    kernel = functools.partial(_symmetry_loss_kernel, bones, w_static, D, 1.0 / B)

    out = pl.pallas_call(
        kernel,
        out_shape=jax.ShapeDtypeStruct((1, 1), jnp.float32),
        grid_spec=pltpu.PrefetchScalarGridSpec(
            num_scalar_prefetch=0,
            grid=(num_blocks,),
            in_specs=[
                # Full (J*D) rows, block_b lanes per grid step; auto double-buffered.
                pl.BlockSpec((J * D, block_b), lambda i: (0, i)),
            ],
            out_specs=pl.BlockSpec(memory_space=pltpu.MemorySpace.SMEM),
            scratch_shapes=[pltpu.SMEM((1, 1), jnp.float32)],
        ),
        compiler_params=pltpu.CompilerParams(
            dimension_semantics=("arbitrary",),
        ),
        cost_estimate=cost,
    )(y2d)
    return out[0, 0]


def _reference_symmetry_loss(ypred, left_bones, right_bones, weights):
    """Plain-JAX reference mirroring the torch forward."""
    loss = 0.0
    for i, (l, r) in enumerate(zip(left_bones, right_bones)):
        l_dist = jnp.sqrt(((ypred[..., l[0], :] - ypred[..., l[1], :]) ** 2).sum(-1))
        r_dist = jnp.sqrt(((ypred[..., r[0], :] - ypred[..., r[1], :]) ** 2).sum(-1))
        loss = loss + weights[i] * (l_dist - r_dist) ** 2
    return jnp.mean(loss)


if __name__ == "__main__":
    key = jax.random.PRNGKey(0)
    B, J, D = 2, 16, 3
    ypred = jax.random.normal(key, (B, J, D), dtype=jnp.float32)

    # Synthetic skeleton: 3 left/right bone pairs (joint-index pairs).
    left_bones = [(0, 1), (1, 2), (2, 3)]
    right_bones = [(4, 5), (5, 6), (6, 7)]
    ones_w = jnp.ones((J,), dtype=jnp.float32)   # torch default: ones(J)

    # Case 1: f32, single block.
    loss = jax.block_until_ready(symmetry_loss(ypred, left_bones, right_bones))
    ref = _reference_symmetry_loss(ypred, left_bones, right_bones, ones_w)
    assert jnp.allclose(loss, ref, rtol=1e-4, atol=1e-4), (loss, ref)

    # Case 2: bf16 input passed through unchanged, multi-block grid (block_b=128
    # -> 3 grid steps) with zero-padded last block; explicit weights.
    B2 = 300
    yp_bf16 = jax.random.normal(jax.random.PRNGKey(1), (B2, J, D), dtype=jnp.bfloat16)
    w2 = jnp.arange(1, J + 1, dtype=jnp.float32) / J
    loss2 = jax.block_until_ready(
        symmetry_loss(yp_bf16, left_bones, right_bones, weights=w2, block_b=128))
    ref2 = _reference_symmetry_loss(yp_bf16.astype(jnp.float32),
                                    left_bones, right_bones, w2)
    assert jnp.allclose(loss2, ref2, rtol=1e-3, atol=1e-3), (loss2, ref2)

    print("KERNEL_OK")
</pallas_src>

<mosaic_0001>
module attributes {stable_mosaic.version = 11 : i64} {
  func.func @_symmetry_loss_kernel(%arg0: i32, %arg1: memref<48x128xf32, #tpu.memory_space<vmem>>, %arg2: memref<1x1xf32, #tpu.memory_space<smem>>, %arg3: memref<1x1xf32, #tpu.memory_space<smem>>) attributes {dimension_semantics = [#tpu.dimension_semantics<arbitrary>], iteration_bounds = array<i64: 1>, scalar_prefetch = 0 : i64, scratch_operands = 1 : i64, tpu.core_type = #tpu.core_type<tc>, window_params = [{transform_indices = @transform_0, window_bounds = array<i64: 48, 128>}, {transform_indices = @transform_1, window_bounds = array<i64: 1, 1>}]} {
    %c0_i32 = arith.constant 0 : i32
    %0 = arith.cmpi eq, %arg0, %c0_i32 : i32
    %1 = arith.extui %0 : i1 to i32
    %c0_i32_0 = arith.constant 0 : i32
    %2 = arith.cmpi ne, %1, %c0_i32_0 : i32
    scf.if %2 {
      %cst_36 = arith.constant 0.000000e+00 : f32
      %c0_37 = arith.constant 0 : index
      %c0_38 = arith.constant 0 : index
      %77 = memref.load %arg3[%c0_37, %c0_38] : memref<1x1xf32, #tpu.memory_space<smem>>
      memref.store %cst_36, %arg3[%c0_37, %c0_38] : memref<1x1xf32, #tpu.memory_space<smem>>
    } else {
    }
    %cst = arith.constant 0.000000e+00 : f32
    %3 = vector.broadcast %cst : f32 to vector<1x128xf32>
    %c0 = arith.constant 0 : index
    %c0_1 = arith.constant 0 : index
    %4 = vector.load %arg1[%c0, %c0_1] : memref<48x128xf32, #tpu.memory_space<vmem>>, vector<3x128xf32>
    %c3 = arith.constant 3 : index
    %c0_2 = arith.constant 0 : index
    %5 = vector.load %arg1[%c3, %c0_2] : memref<48x128xf32, #tpu.memory_space<vmem>>, vector<3x128xf32>
    %6 = arith.subf %4, %5 : vector<3x128xf32>
    %c12 = arith.constant 12 : index
    %c0_3 = arith.constant 0 : index
    %7 = vector.load %arg1[%c12, %c0_3] : memref<48x128xf32, #tpu.memory_space<vmem>>, vector<3x128xf32>
    %c15 = arith.constant 15 : index
    %c0_4 = arith.constant 0 : index
    %8 = vector.load %arg1[%c15, %c0_4] : memref<48x128xf32, #tpu.memory_space<vmem>>, vector<3x128xf32>
    %9 = arith.subf %7, %8 : vector<3x128xf32>
    %10 = arith.mulf %6, %6 : vector<3x128xf32>
    %cst_5 = arith.constant dense<0.000000e+00> : vector<128xf32>
    %11 = vector.multi_reduction <add>, %10, %cst_5 [0] : vector<3x128xf32> to vector<128xf32>
    %12 = vector.shape_cast %11 : vector<128xf32> to vector<1x128xf32>
    %13 = arith.mulf %9, %9 : vector<3x128xf32>
    %cst_6 = arith.constant dense<0.000000e+00> : vector<128xf32>
    %14 = vector.multi_reduction <add>, %13, %cst_6 [0] : vector<3x128xf32> to vector<128xf32>
    %15 = vector.shape_cast %14 : vector<128xf32> to vector<1x128xf32>
    %16 = arith.addf %12, %15 : vector<1x128xf32>
    %17 = arith.mulf %12, %15 : vector<1x128xf32>
    %18 = math.sqrt %17 : vector<1x128xf32>
    %cst_7 = arith.constant 2.000000e+00 : f32
    %19 = vector.broadcast %cst_7 : f32 to vector<1x128xf32>
    %20 = arith.mulf %19, %18 : vector<1x128xf32>
    %21 = arith.subf %16, %20 : vector<1x128xf32>
    %cst_8 = arith.constant 1.000000e+00 : f32
    %22 = vector.broadcast %cst_8 : f32 to vector<1x128xf32>
    %23 = arith.mulf %22, %21 : vector<1x128xf32>
    %24 = arith.addf %3, %23 : vector<1x128xf32>
    %c3_9 = arith.constant 3 : index
    %c0_10 = arith.constant 0 : index
    %25 = vector.load %arg1[%c3_9, %c0_10] : memref<48x128xf32, #tpu.memory_space<vmem>>, vector<3x128xf32>
    %c6 = arith.constant 6 : index
    %c0_11 = arith.constant 0 : index
    %26 = vector.load %arg1[%c6, %c0_11] : memref<48x128xf32, #tpu.memory_space<vmem>>, vector<3x128xf32>
    %27 = arith.subf %25, %26 : vector<3x128xf32>
    %c15_12 = arith.constant 15 : index
    %c0_13 = arith.constant 0 : index
    %28 = vector.load %arg1[%c15_12, %c0_13] : memref<48x128xf32, #tpu.memory_space<vmem>>, vector<3x128xf32>
    %c18 = arith.constant 18 : index
    %c0_14 = arith.constant 0 : index
    %29 = vector.load %arg1[%c18, %c0_14] : memref<48x128xf32, #tpu.memory_space<vmem>>, vector<3x128xf32>
    %30 = arith.subf %28, %29 : vector<3x128xf32>
    %31 = arith.mulf %27, %27 : vector<3x128xf32>
    %cst_15 = arith.constant dense<0.000000e+00> : vector<128xf32>
    %32 = vector.multi_reduction <add>, %31, %cst_15 [0] : vector<3x128xf32> to vector<128xf32>
    %33 = vector.shape_cast %32 : vector<128xf32> to vector<1x128xf32>
    %34 = arith.mulf %30, %30 : vector<3x128xf32>
    %cst_16 = arith.constant dense<0.000000e+00> : vector<128xf32>
    %35 = vector.multi_reduction <add>, %34, %cst_16 [0] : vector<3x128xf32> to vector<128xf32>
    %36 = vector.shape_cast %35 : vector<128xf32> to vector<1x128xf32>
    %37 = arith.addf %33, %36 : vector<1x128xf32>
    %38 = arith.mulf %33, %36 : vector<1x128xf32>
    %39 = math.sqrt %38 : vector<1x128xf32>
    %cst_17 = arith.constant 2.000000e+00 : f32
    %40 = vector.broadcast %cst_17 : f32 to vector<1x128xf32>
    %41 = arith.mulf %40, %39 : vector<1x128xf32>
    %42 = arith.subf %37, %41 : vector<1x128xf32>
    %cst_18 = arith.constant 1.000000e+00 : f32
    %43 = vector.broadcast %cst_18 : f32 to vector<1x128xf32>
    %44 = arith.mulf %43, %42 : vector<1x128xf32>
    %45 = arith.addf %24, %44 : vector<1x128xf32>
    %c6_19 = arith.constant 6 : index
    %c0_20 = arith.constant 0 : index
    %46 = vector.load %arg1[%c6_19, %c0_20] : memref<48x128xf32, #tpu.memory_space<vmem>>, vector<3x128xf32>
    %c9 = arith.constant 9 : index
    %c0_21 = arith.constant 0 : index
    %47 = vector.load %arg1[%c9, %c0_21] : memref<48x128xf32, #tpu.memory_space<vmem>>, vector<3x128xf32>
    %48 = arith.subf %46, %47 : vector<3x128xf32>
    %c18_22 = arith.constant 18 : index
    %c0_23 = arith.constant 0 : index
    %49 = vector.load %arg1[%c18_22, %c0_23] : memref<48x128xf32, #tpu.memory_space<vmem>>, vector<3x128xf32>
    %c21 = arith.constant 21 : index
    %c0_24 = arith.constant 0 : index
    %50 = vector.load %arg1[%c21, %c0_24] : memref<48x128xf32, #tpu.memory_space<vmem>>, vector<3x128xf32>
    %51 = arith.subf %49, %50 : vector<3x128xf32>
    %52 = arith.mulf %48, %48 : vector<3x128xf32>
    %cst_25 = arith.constant dense<0.000000e+00> : vector<128xf32>
    %53 = vector.multi_reduction <add>, %52, %cst_25 [0] : vector<3x128xf32> to vector<128xf32>
    %54 = vector.shape_cast %53 : vector<128xf32> to vector<1x128xf32>
    %55 = arith.mulf %51, %51 : vector<3x128xf32>
    %cst_26 = arith.constant dense<0.000000e+00> : vector<128xf32>
    %56 = vector.multi_reduction <add>, %55, %cst_26 [0] : vector<3x128xf32> to vector<128xf32>
    %57 = vector.shape_cast %56 : vector<128xf32> to vector<1x128xf32>
    %58 = arith.addf %54, %57 : vector<1x128xf32>
    %59 = arith.mulf %54, %57 : vector<1x128xf32>
    %60 = math.sqrt %59 : vector<1x128xf32>
    %cst_27 = arith.constant 2.000000e+00 : f32
    %61 = vector.broadcast %cst_27 : f32 to vector<1x128xf32>
    %62 = arith.mulf %61, %60 : vector<1x128xf32>
    %63 = arith.subf %58, %62 : vector<1x128xf32>
    %cst_28 = arith.constant 1.000000e+00 : f32
    %64 = vector.broadcast %cst_28 : f32 to vector<1x128xf32>
    %65 = arith.mulf %64, %63 : vector<1x128xf32>
    %66 = arith.addf %45, %65 : vector<1x128xf32>
    %c0_29 = arith.constant 0 : index
    %c0_30 = arith.constant 0 : index
    %67 = memref.load %arg3[%c0_29, %c0_30] : memref<1x1xf32, #tpu.memory_space<smem>>
    %68 = vector.shape_cast %66 : vector<1x128xf32> to vector<1x1x128xf32>
    %cst_31 = arith.constant dense<0.000000e+00> : vector<1xf32>
    %69 = vector.multi_reduction <add>, %68, %cst_31 [1, 2] : vector<1x1x128xf32> to vector<1xf32>
    %70 = vector.shape_cast %69 : vector<1xf32> to vector<1x1x1xf32>
    %71 = vector.extract %70[0, 0, 0] : f32 from vector<1x1x1xf32>
    %72 = arith.addf %67, %71 : f32
    %c0_32 = arith.constant 0 : index
    %c0_33 = arith.constant 0 : index
    %73 = memref.load %arg3[%c0_32, %c0_33] : memref<1x1xf32, #tpu.memory_space<smem>>
    memref.store %72, %arg3[%c0_32, %c0_33] : memref<1x1xf32, #tpu.memory_space<smem>>
    %c0_i32_34 = arith.constant 0 : i32
    %74 = arith.cmpi eq, %arg0, %c0_i32_34 : i32
    %75 = arith.extui %74 : i1 to i32
    %c0_i32_35 = arith.constant 0 : i32
    %76 = arith.cmpi ne, %75, %c0_i32_35 : i32
    scf.if %76 {
      %c0_36 = arith.constant 0 : index
      %c0_37 = arith.constant 0 : index
      %77 = memref.load %arg3[%c0_36, %c0_37] : memref<1x1xf32, #tpu.memory_space<smem>>
      %cst_38 = arith.constant 5.000000e-01 : f32
      %78 = arith.mulf %77, %cst_38 : f32
      %c0_39 = arith.constant 0 : index
      %c0_40 = arith.constant 0 : index
      %79 = memref.load %arg2[%c0_39, %c0_40] : memref<1x1xf32, #tpu.memory_space<smem>>
      memref.store %78, %arg2[%c0_39, %c0_40] : memref<1x1xf32, #tpu.memory_space<smem>>
    } else {
    }
    return
  }
  func.func @transform_0(%arg0: i32) -> (i32, i32) {
    %c0_i32 = arith.constant 0 : i32
    %c0_i32_0 = arith.constant 0 : i32
    return %c0_i32, %arg0 : i32, i32
  }
  func.func @transform_1(%arg0: i32) -> (i32, i32) {
    %c0_i32 = arith.constant 0 : i32
    %c0_i32_0 = arith.constant 0 : i32
    %c0_i32_1 = arith.constant 0 : i32
    return %c0_i32, %c0_i32_0 : i32, i32
  }
}

</mosaic_0001>

<bundles_post_ra>
// kernel: tpu_custom_call.1
= control target key start
LH: loop header
LB: loop body
LE: loop exit
PB: predicated region body
PF: predicated region fallthrough
CT: control target
= control target key end

     0   :  { %6 = vsyncpa [#allocation4], 0  ;;  %s261_s0 = inlined_call_operand.hbm [shape: f32[48,128], index: 0, kind: input, shape index: {}]   ;;  %s262_s1 = inlined_call_operand.hbm [shape: f32[1,1], index: 1, kind: output, shape index: {}]  }
   0x1   :  { %7 = vsyncpa [#allocation5], 0  ;;  %s12_s8 = sshll.u32 %s261_s0, 4  ;;  %s235_s9 = smov [#allocation3]   ;;  %s13_s8 = int_to_ptr.hbm [resolvable:$true] %s12_s8 }
   0x2   :  { %s14_s10 = sshll.u32 %s235_s9, 4  ;;  %s236_s11 = smov 128   ;;  %s15_s10 = int_to_ptr.vmem [resolvable:$true] %s14_s10 }
   0x3   :  { %s237_s12 = smov 8  }
   0x4   :  { %20 = dma.hbm_to_vmem [thread:$0]  %s13_s8, 768, %s15_s10, [#allocation4], %s236_s11, %s236_s11, %s237_s12  }
   0x5   :  { %231 = dma.done.wait [#allocation4], 768  }
   0x6   :  { %232 = vsyncadd [#allocation4], 4294966528  ;;  %v31_v0 = vld [vmem:[#allocation3] sm:$0x7]  ;;  %v32_v1 = vld [vmem:[#allocation3 + $0x3] sm:$0x7] }
   0x7   :  { %v34_v2 = vld [vmem:[#allocation3 + $0xc] sm:$0x7]  ;;  %v33_v3 = vsub.f32 %v31_v0, %v32_v1  ;;  %v35_v4 = vld [vmem:[#allocation3 + $0xf] sm:$0x7]  ;;  %v71_v5 = vld [vmem:[#allocation3 + $0x6] sm:$0x7] }
   0x8   :  { %v73_v6 = vld [vmem:[#allocation3 + $0x12] sm:$0x7]  ;;  %v36_v7 = vsub.f32 %v34_v2, %v35_v4  ;;  %vm38_vm0 = vcmask 1042432   ;;  %v72_v8 = vsub.f32 %v32_v1, %v71_v5  ;;  %v108_v10 = vld [vmem:[#allocation3 + $0x9] sm:$0x7]  ;;  %vm146_vm7 = vcmask 1040384  }
   0x9   :  { %v74_v9 = vsub.f32 %v35_v4, %v73_v6  ;;  %v110_v11 = vld [vmem:[#allocation3 + $0x15] sm:$0x7]  ;;  %v37_v12 = vmul.f32 %v33_v3, %v33_v3  ;;  %v109_v13 = vsub.f32 %v71_v5, %v108_v10  ;;  %s172_s14 = sshll.u32 %s262_s1, 4  ;;  %s238_s17 = smov [#allocation6]   ;;  %s173_s14 = int_to_ptr.hbm [resolvable:$true] %s172_s14 }
   0xa   :  { %v111_v14 = vsub.f32 %v73_v6, %v110_v11  ;;  %v46_v15 = vmul.f32 %v36_v7, %v36_v7  ;;  %v75_v16 = vmul.f32 %v72_v8, %v72_v8 }
   0xb   :  { %v83_v17 = vmul.f32 %v74_v9, %v74_v9  ;;  %v39_v18 = vsel %vm38_vm0, %v37_v12, 0.0  ;;  %v112_v19 = vmul.f32 %v109_v13, %v109_v13 }
   0xc   :  { %v120_v20 = vmul.f32 %v111_v14, %v111_v14  ;;  %v40_v21 = vrot.slane %v39_v18, 4  ;;  %v47_v22 = vsel %vm38_vm0, %v46_v15, 0.0  ;;  %v76_v23 = vsel %vm38_vm0, %v75_v16, 0.0 }
   0xd   :  { %v84_v24 = vsel %vm38_vm0, %v83_v17, 0.0  ;;  %v48_v25 = vrot.slane %v47_v22, 4  ;;  %v77_v26 = vrot.slane %v76_v23, 4  ;;  %v113_v28 = vsel %vm38_vm0, %v112_v19, 0.0 }
   0xe   :  { %v85_v27 = vrot.slane %v84_v24, 4  ;;  %v41_v29 = vadd.f32 %v40_v21, %v39_v18  ;;  %v114_v30 = vrot.slane %v113_v28, 4  ;;  %v121_v31 = vsel %vm38_vm0, %v120_v20, 0.0 }
   0xf   :  { %v49_v32 = vadd.f32 %v48_v25, %v47_v22  ;;  %v78_v33 = vadd.f32 %v77_v26, %v76_v23  ;;  %v122_v35 = vrot.slane %v121_v31, 4 }
  0x10   :  { %v86_v34 = vadd.f32 %v85_v27, %v84_v24  ;;  %v42_v36 = vrot.slane %v41_v29, 2  ;;  %v115_v37 = vadd.f32 %v114_v30, %v113_v28 }
  0x11   :  { %v50_v38 = vrot.slane %v49_v32, 2  ;;  %v79_v39 = vrot.slane %v78_v33, 2  ;;  %v123_v41 = vadd.f32 %v122_v35, %v121_v31 }
  0x12   :  { %v87_v40 = vrot.slane %v86_v34, 2  ;;  %v43_v42 = vadd.f32 %v42_v36, %v41_v29  ;;  %v116_v43 = vrot.slane %v115_v37, 2 }
  0x13   :  { %v51_v44 = vadd.f32 %v50_v38, %v49_v32  ;;  %v80_v45 = vadd.f32 %v79_v39, %v78_v33  ;;  %v124_v47 = vrot.slane %v123_v41, 2 }
  0x14   :  { %v88_v46 = vadd.f32 %v87_v40, %v86_v34  ;;  %v44_v48 = vrot.slane %v43_v42, 1  ;;  %v117_v49 = vadd.f32 %v116_v43, %v115_v37 }
  0x15   :  { %v52_v50 = vrot.slane %v51_v44, 1  ;;  %v81_v51 = vrot.slane %v80_v45, 1  ;;  %v125_v53 = vadd.f32 %v124_v47, %v123_v41 }
  0x16   :  { %v89_v52 = vrot.slane %v88_v46, 1  ;;  %v45_v54 = vadd.f32 %v44_v48, %v43_v42  ;;  %v118_v55 = vrot.slane %v117_v49, 1 }
  0x17   :  { %v53_v56 = vadd.f32 %v52_v50, %v51_v44  ;;  %v82_v57 = vadd.f32 %v81_v51, %v80_v45  ;;  %v126_v59 = vrot.slane %v125_v53, 1 }
  0x18   :  { %v90_v58 = vadd.f32 %v89_v52, %v88_v46  ;;  %v119_v62 = vadd.f32 %v118_v55, %v117_v49 }
  0x19   :  { %v55_v60 = vmul.f32 %v53_v56, %v45_v54  ;;  %v127_v63 = vadd.f32 %v126_v59, %v125_v53  ;;  %v54_v22 = vadd.f32 %v53_v56, %v45_v54 }
  0x1a   :  { %v92_v61 = vmul.f32 %v90_v58, %v82_v57  ;;  %v91_v24 = vadd.f32 %v90_v58, %v82_v57 }
  0x1b   :  { %189 = vrsqrt.f32 %v55_v60  ;;  %v129_v0 = vmul.f32 %v127_v63, %v119_v62  ;;  %vm63_vm1 = vcmp.eq.f32.partialorder %v55_v60, inf  ;;  %vm65_vm2 = vcmp.eq.f32.partialorder %v55_v60, 0.0 }
  0x1c   :  { %191 = vrsqrt.f32 %v92_v61  ;;  %v66_v16 = vand.u32 2147483648, %v55_v60  ;;  %vm100_vm3 = vcmp.eq.f32.partialorder %v92_v61, inf  ;;  %v103_v19 = vand.u32 2147483648, %v92_v61 }
  0x1d   :  { %193 = vrsqrt.f32 %v129_v0  ;;  %vm102_vm4 = vcmp.eq.f32.partialorder %v92_v61, 0.0  ;;  %vm137_vm5 = vcmp.eq.f32.partialorder %v129_v0, inf  ;;  %v140_v28 = vand.u32 2147483648, %v129_v0 }
  0x1e   :  { %vm139_vm6 = vcmp.eq.f32.partialorder %v129_v0, 0.0  ;;  %v128_v34 = vadd.f32 %v127_v63, %v119_v62 }
  0x21   :  { %v190_v1 = vpop.eup %189 }
  0x22   :  { %v192_v2 = vpop.eup %191  ;;  %v57_v3 = vmul.f32 %v190_v1, %v55_v60 }
  0x23   :  { %v94_v4 = vmul.f32 %v192_v2, %v92_v61  ;;  %v194_v6 = vpop.eup %193 }
  0x24   :  { %v58_v5 = vmul.f32 %v190_v1, %v57_v3  ;;  %v131_v9 = vmul.f32 %v194_v6, %v129_v0 }
  0x25   :  { %v95_v7 = vmul.f32 %v192_v2, %v94_v4 }
  0x26   :  { %v59_v8 = vmul.f32 0.5, %v58_v5  ;;  %v132_v12 = vmul.f32 %v194_v6, %v131_v9 }
  0x27   :  { %v96_v10 = vmul.f32 0.5, %v95_v7 }
  0x28   :  { %v60_v11 = vsub.f32 1.5, %v59_v8  ;;  %v133_v15 = vmul.f32 0.5, %v132_v12 }
  0x29   :  { %v97_v13 = vsub.f32 1.5, %v96_v10 }
  0x2a   :  { %v61_v14 = vmul.f32 %v190_v1, %v60_v11  ;;  %v134_v20 = vsub.f32 1.5, %v133_v15 }
  0x2b   :  { %v98_v17 = vmul.f32 %v192_v2, %v97_v13 }
  0x2c   :  { %v62_v18 = vmul.f32 %v61_v14, %v55_v60  ;;  %v135_v25 = vmul.f32 %v194_v6, %v134_v20 }
  0x2d   :  { %v99_v21 = vmul.f32 %v98_v17, %v92_v61 }
  0x2e   :  { %v64_v23 = vsel %vm63_vm1, %v55_v60, %v62_v18  ;;  %v136_v31 = vmul.f32 %v135_v25, %v129_v0 }
  0x2f   :  { %v67_v26 = vsel %vm65_vm2, %v66_v16, %v64_v23  ;;  %v101_v27 = vsel %vm100_vm3, %v92_v61, %v99_v21 }
  0x30   :  { %v68_v29 = vmul.f32 2.0, %v67_v26  ;;  %v104_v30 = vsel %vm102_vm4, %v103_v19, %v101_v27  ;;  %v138_v35 = vsel %vm137_vm5, %v129_v0, %v136_v31 }
  0x31   :  { %v105_v32 = vmul.f32 2.0, %v104_v30  ;;  %v141_v37 = vsel %vm139_vm6, %v140_v28, %v138_v35 }
  0x32   :  { %v69_v33 = vsub.f32 %v54_v22, %v68_v29  ;;  %v142_v38 = vmul.f32 2.0, %v141_v37 }
  0x33   :  { %v106_v36 = vsub.f32 %v91_v24, %v105_v32 }
  0x34   :  { %v143_v40 = vsub.f32 %v128_v34, %v142_v38 }
  0x35   :  { %v107_v39 = vadd.f32 %v106_v36, %v69_v33 }
  0x37   :  { %v144_v41 = vadd.f32 %v143_v40, %v107_v39 }
  0x39   :  { %v147_v42 = vsel %vm146_vm7, %v144_v41, 0.0 }
  0x3a   :  { %148 = vadd.xlane.f32.xlu0 %v147_v42 }
  0xad   :  { %v149_v43 = vpop.xlane.xlu0 %148 }
  0xae   :  { %v150_v44 = vrot.slane %v149_v43, 4 }
  0xb0   :  { %v151_v45 = vadd.f32 %v150_v44, %v149_v43 }
  0xb2   :  { %v152_v46 = vrot.slane %v151_v45, 2 }
  0xb4   :  { %v153_v47 = vadd.f32 %v152_v46, %v151_v45 }
  0xb6   :  { %v154_v48 = vrot.slane %v153_v47, 1 }
  0xb8   :  { %v155_v49 = vadd.f32 %v154_v48, %v153_v47 }
  0xba   :  { %183 = vpush %v155_v49 }
  0xeb   :  { %s184_s15 = spop %183 }
  0xec   :  { %s164_s16 = smul.f32 0.5, %s184_s15 }
  0xee   :  { %166 = sst [smem:[#allocation6]] %s164_s16 }
  0xef   :  { %175 = dma.smem_to_hbm %s238_s17, 16, %s173_s14, [#allocation5]  }
  0xf0   :  { %233 = dma.done.wait [#allocation5], 16  }
  0xf1   :  { %234 = vsyncadd [#allocation5], 4294967280 }
  0xf2   :  { %180 = sfence }
  0xf3   :  { %181 = vsyncpa [#allocation4], 1 }
  0xf4   :  { %182 = vsyncpa [#allocation5], 1 }

</bundles_post_ra>
